<compile_context>
chip_gen: v6e
topology: v6e:2x2x1
jax: 0.10.0
libtpu: 0.0.40
codegen_flags: <defaults>
</compile_context>

<pallas_src>
import functools

import jax
import jax.numpy as jnp
from jax import lax
from jax.experimental import pallas as pl
from jax.experimental.pallas import tpu as pltpu

_NEG = -1e30  # "minus infinity" that stays finite under compare and exp -> 0.


def _round_up(x, m):
    return (x + m - 1) // m * m


def _cdiv(a, b):
    return -(-a // b)


def _choose_tm(m, kc, itemsize):
    """Row tile for the logits block, budgeted on VMEM footprint per row:
       ~6 live f32 slabs of the KC-wide row (double-buffered input +
       exp/picked temps/masks) + the (8,128)-tiled int32 target block
       (4 lanes pad to 128 -> 512 B/row, double-buffered)."""
    sub = max(8, (8 * 4) // itemsize)          # sublane tile: 8 f32, 16 bf16, ...
    per_row = 6 * kc * 4 + 2 * 512
    budget = 24 << 20                          # ~24 MiB working set per grid step
    tm = (budget // per_row) // sub * sub
    tm = max(sub, min(tm, _round_up(m, sub)))
    return int(tm)


def _trans_ce_kernel(logits_ref, tgt_ref, out_ref, *, num_classes):
    """One (layer, row-block) grid step — fully independent, no accumulation.

    logits_ref: (1, TM, K*C) float — all heads' logits, lane-dense.
    tgt_ref:    (TM, 4) int32 — columns [tx, ty, tz, valid].
    out_ref:    (1, 1, 2, 128) f32 — row 0: CE sum, row 1: correct count.
    """
    c = num_classes
    block = logits_ref[0].astype(jnp.float32)            # (TM, KC)
    tm, kc = block.shape

    tgt = tgt_ref[...]                                   # (TM, 4) int32
    tx = tgt[:, 0:1]
    ty = tgt[:, 1:2]
    tz = tgt[:, 2:3]
    valid = tgt[:, 3:4] > 0                              # (TM, 1) bool

    lane = lax.broadcasted_iota(jnp.int32, (tm, kc), 1)

    # --- per-head row maxes: the only remaining XLU lane reductions (3 per
    #     row block, down from 12 in v1).  Masked full-slab maxes avoid any
    #     unaligned per-head lane slicing.
    def head_max(h):
        in_head = jnp.logical_and(lane >= h * c, lane < (h + 1) * c)
        return jnp.max(jnp.where(in_head, block, _NEG), axis=-1, keepdims=True)

    max_x = head_max(0)
    max_y = head_max(1)
    max_z = head_max(2)
    gmax = jnp.maximum(jnp.maximum(max_x, max_y), max_z)  # (TM, 1)

    # exp of the x/y/z slab shifted by the global row max.  Lanes of heads
    # >= 3 (K > 3 inputs) and out-of-slab lanes are forced to exp(-inf)=0 so
    # they can never overflow/poison the selector matmul.
    shifted = jnp.where(lane < 3 * c, block - gmax, _NEG)
    e = jnp.exp(shifted)                                  # (TM, KC) f32

    # Target one-hot over the concatenated slab -> picked-logit matrix.
    onehot = jnp.logical_or(jnp.logical_or(lane == tx, lane == ty + c),
                            lane == tz + 2 * c)
    pk = jnp.where(onehot, block, 0.0)                    # (TM, KC) f32

    # Static head-selector matrix: column h is the 0/1 indicator of head h's
    # lanes (lane-dense 128-wide output).
    sj = lax.broadcasted_iota(jnp.int32, (kc, 128), 0)
    scol = lax.broadcasted_iota(jnp.int32, (kc, 128), 1)
    head_of_lane = ((sj >= c).astype(jnp.int32) + (sj >= 2 * c).astype(jnp.int32))
    sel = jnp.where(jnp.logical_and(scol == head_of_lane, sj < 3 * c),
                    1.0, 0.0).astype(jnp.float32)         # (KC, 128)

    # Lane-sum reductions on the (otherwise idle) MXU instead of XLU trees.
    # HIGHEST keeps f32 accuracy for the exp sums and makes the picked logit
    # (a one-hot row) bit-exact for the correctness compare below.
    sums_e = jnp.dot(e, sel, preferred_element_type=jnp.float32,
                     precision=lax.Precision.HIGHEST)      # (TM, 128)
    sums_p = jnp.dot(pk, sel, preferred_element_type=jnp.float32,
                     precision=lax.Precision.HIGHEST)      # (TM, 128)

    se_x = sums_e[:, 0:1]
    se_y = sums_e[:, 1:2]
    se_z = sums_e[:, 2:3]
    pk_x = sums_p[:, 0:1]
    pk_y = sums_p[:, 1:2]
    pk_z = sums_p[:, 2:3]

    # Cross-entropy:  sum_h (logsumexp_h - picked_h), logs on the EUP.
    lse_sum = jnp.log(se_x) + jnp.log(se_y) + jnp.log(se_z) + 3.0 * gmax
    ce_row = lse_sum - (pk_x + pk_y + pk_z)                # (TM, 1)

    # "All three axes correct": the target logit equals its head max.
    # (Exact-tie rows with a lower-index class count as correct here, whereas
    #  torch's first-index argmax counts them as wrong — measure-zero case.)
    correct = jnp.logical_and(
        valid,
        jnp.logical_and(pk_x >= max_x,
                        jnp.logical_and(pk_y >= max_y, pk_z >= max_z)))

    # jnp.where (not multiply) so NaN/garbage in out-of-bounds rows never leaks.
    ce_blk = jnp.sum(jnp.where(valid, ce_row, 0.0))
    cor_blk = jnp.sum(jnp.where(correct, 1.0, 0.0))

    # One lane-dense (1,1,2,128) store: row 0 = CE sum, row 1 = correct count.
    sub = lax.broadcasted_iota(jnp.int32, (1, 1, 2, 128), 2)
    out_ref[...] = jnp.where(sub == 0, ce_blk, cor_blk)


@functools.partial(jax.jit, static_argnames=("num_classes",))
def _ce_correct_sums(logits, tgt, *, num_classes):
    """logits: (L, M, K*C) float; tgt: (M, 4) int32
       -> ((L,) CE sums over valid bricks, (L,) all-correct counts)."""
    L, M, KC = logits.shape
    tm = _choose_tm(M, KC, jnp.dtype(logits.dtype).itemsize)
    nblk = _cdiv(M, tm)
    mp = nblk * tm

    # Pad only the tiny target/validity table (valid=0 for padded rows); the
    # big logits tensor is never padded or copied (trailing partial block is
    # neutralised by the validity mask inside the kernel).
    tgt_p = jnp.pad(tgt, ((0, mp - M), (0, 0)))

    out = pl.pallas_call(
        functools.partial(_trans_ce_kernel, num_classes=num_classes),
        out_shape=jax.ShapeDtypeStruct((L, nblk, 2, 128), jnp.float32),
        grid_spec=pltpu.PrefetchScalarGridSpec(
            num_scalar_prefetch=0,
            grid=(L, nblk),
            in_specs=[
                pl.BlockSpec((1, tm, KC), lambda l, i: (l, i, 0)),
                pl.BlockSpec((tm, 4), lambda l, i: (i, 0)),
            ],
            out_specs=pl.BlockSpec((1, 1, 2, 128), lambda l, i: (l, i, 0, 0)),
        ),
        compiler_params=pltpu.CompilerParams(
            # Both axes parallel (no cross-step accumulation) so v7x's two
            # TensorCores are both loaded even when L == 1; harmless on
            # single-TC v5e / v6e.
            dimension_semantics=("parallel", "parallel"),
            vmem_limit_bytes=48 * 1024 * 1024,
        ),
    )(logits, tgt_p)

    ce_sums = jnp.sum(out[:, :, 0, 0], axis=1)
    cor_sums = jnp.sum(out[:, :, 1, 0], axis=1)
    return ce_sums, cor_sums


def _build_full_targets(target, brick_padding_list, B, N):
    """Scatter per-sample valid-brick targets onto the full (B*N,) brick grid."""
    def full(key):
        rows = []
        for b in range(B):
            t_b = jnp.asarray(target[key][b]).reshape(-1).astype(jnp.int32)
            pad_b = int(brick_padding_list[b])
            rows.append(jnp.concatenate([t_b, jnp.zeros((pad_b,), jnp.int32)]))
        return jnp.concatenate(rows)

    valid_rows = []
    for b in range(B):
        pad_b = int(brick_padding_list[b])
        valid_rows.append(jnp.concatenate(
            [jnp.ones((N - pad_b,), jnp.int32), jnp.zeros((pad_b,), jnp.int32)]))
    valid = jnp.concatenate(valid_rows)
    return full('gt_trans_x'), full('gt_trans_y'), full('gt_trans_z'), valid


class TransLossV5:
    """JAX/Pallas port of SCANet TransLossV5 (x/y/z translation-class CE + accuracy)."""

    def __init__(self, weight=1.0):
        self.weight = float(weight)

    def __call__(self, output, target, brick_padding_list):
        return self.forward(output, target, brick_padding_list)

    def forward(self, output, target, brick_padding_list):
        trans_out = output['TransHead']
        if trans_out.ndim == 5:
            L, B, N, K, C = trans_out.shape
            stacked = trans_out
        else:
            B, N, K, C = trans_out.shape
            L = 1
            stacked = trans_out[None]
        assert K >= 3, "TransHead must provide at least x/y/z heads"
        M = B * N

        tx, ty, tz, valid = _build_full_targets(target, brick_padding_list, B, N)
        tgt = jnp.stack([tx, ty, tz, valid], axis=1).astype(jnp.int32)   # (M, 4)
        n_valid = int(sum(N - int(p) for p in brick_padding_list))
        denom = max(n_valid, 1)   # guard n_valid == 0 (original torch would NaN/crash)

        # Contiguous reshape (no HBM copy, keeps all K heads); the kernel only
        # ever touches the first 3 heads' lanes.
        logits = stacked.reshape(L, M, K * C)

        ce_sums, cor_sums = _ce_correct_sums(logits, tgt, num_classes=C)   # (L,), (L,)

        trans_loss = self.weight * jnp.sum(ce_sums) / jnp.float32(denom)

        # Accuracy is a host-side Python float in the original (.item() + round).
        cor_host = jax.device_get(cor_sums)
        accs = [round(float(cc) / denom * 100.0, 2) for cc in cor_host]
        acc = sum(accs) / L

        return trans_loss, {'trans_cls_loss': trans_loss, 'trans_acc': acc}


if __name__ == "__main__":
    import numpy as np

    def make_targets(key, B, N, C, brick_padding_list):
        target = {'gt_trans_x': [], 'gt_trans_y': [], 'gt_trans_z': []}
        keys = jax.random.split(key, 3 * B)
        idx = 0
        for name in ('gt_trans_x', 'gt_trans_y', 'gt_trans_z'):
            for b in range(B):
                n_b = N - brick_padding_list[b]
                target[name].append(jax.random.randint(
                    keys[idx], (n_b, 1), 0, C, dtype=jnp.int32))
                idx += 1
        return target

    def numpy_reference(out_np, target, brick_padding_list, weight):
        # Mirrors the PyTorch module (only the first 3 heads are used).
        L, B, N, K, C = out_np.shape
        valid = np.concatenate([
            np.concatenate([np.ones(N - p, bool), np.zeros(p, bool)])
            for p in brick_padding_list])
        n_valid = int(valid.sum())
        tgts = {k: np.concatenate([np.asarray(jax.device_get(a)).reshape(-1)
                                   for a in target[k]]) for k in target}
        ref_loss, ref_acc = 0.0, 0.0
        for l in range(L):
            layer = out_np[l].reshape(B * N, K, C)[valid]
            correct = np.ones(n_valid, bool)
            layer_loss = 0.0
            for h, name in enumerate(('gt_trans_x', 'gt_trans_y', 'gt_trans_z')):
                logit = layer[:, h]
                t = tgts[name]
                mx = logit.max(-1, keepdims=True)
                lse = np.log(np.exp(logit - mx).sum(-1)) + mx[:, 0]
                layer_loss += float((lse - logit[np.arange(n_valid), t]).mean())
                correct &= (logit.argmax(-1) == t)
            ref_loss += weight * layer_loss
            ref_acc += round(float(correct.sum()) / n_valid * 100.0, 2)
        return ref_loss, ref_acc / L

    key = jax.random.PRNGKey(0)
    k1, k2, k3, k4 = jax.random.split(key, 4)

    # ---- case 1: 5-D (L, B, N, K=3, C) ----
    L, B, N, K, C = 2, 2, 8, 3, 32
    pads = [3, 0]
    trans_out = jax.random.normal(k1, (L, B, N, K, C), dtype=jnp.float32)
    target = make_targets(k2, B, N, C, pads)

    loss_mod = TransLossV5(weight=2.0)
    trans_loss, loss_dict = loss_mod({'TransHead': trans_out}, target, pads)
    trans_loss = jax.block_until_ready(trans_loss)

    ref_loss, ref_acc = numpy_reference(np.asarray(jax.device_get(trans_out)),
                                        target, pads, 2.0)
    assert abs(float(trans_loss) - ref_loss) < 1e-4 + 1e-4 * abs(ref_loss), \
        (float(trans_loss), ref_loss)
    assert abs(loss_dict['trans_acc'] - ref_acc) < 1e-6, \
        (loss_dict['trans_acc'], ref_acc)
    assert float(loss_dict['trans_cls_loss']) == float(trans_loss)

    # ---- case 2: 4-D (B, N, K=4, C) — the extra head must be ignored ----
    B2, N2, K2, C2 = 2, 8, 4, 32
    pads2 = [2, 1]
    trans_out2 = jax.random.normal(k3, (B2, N2, K2, C2), dtype=jnp.float32)
    target2 = make_targets(k4, B2, N2, C2, pads2)

    loss_mod2 = TransLossV5(weight=1.0)
    trans_loss2, loss_dict2 = loss_mod2({'TransHead': trans_out2}, target2, pads2)
    trans_loss2 = jax.block_until_ready(trans_loss2)

    ref_loss2, ref_acc2 = numpy_reference(
        np.asarray(jax.device_get(trans_out2))[None], target2, pads2, 1.0)
    assert abs(float(trans_loss2) - ref_loss2) < 1e-4 + 1e-4 * abs(ref_loss2), \
        (float(trans_loss2), ref_loss2)
    assert abs(loss_dict2['trans_acc'] - ref_acc2) < 1e-6, \
        (loss_dict2['trans_acc'], ref_acc2)

    print("KERNEL_OK")
</pallas_src>

<mosaic_0001>
module attributes {stable_mosaic.version = 11 : i64} {
  func.func @_trans_ce_kernel(%arg0: i32, %arg1: i32, %arg2: memref<1x16x96xf32, #tpu.memory_space<vmem>>, %arg3: memref<16x4xi32, #tpu.memory_space<vmem>>, %arg4: memref<1x1x2x128xf32, #tpu.memory_space<vmem>>) attributes {dimension_semantics = [#tpu.dimension_semantics<parallel>, #tpu.dimension_semantics<parallel>], iteration_bounds = array<i64: 2, 1>, scalar_prefetch = 0 : i64, scratch_operands = 0 : i64, tpu.core_type = #tpu.core_type<tc>, window_params = [{transform_indices = @transform_0, window_bounds = array<i64: 1, 16, 96>}, {transform_indices = @transform_1, window_bounds = array<i64: 16, 4>}, {transform_indices = @transform_2, window_bounds = array<i64: 1, 1, 2, 128>}]} {
    %c0 = arith.constant 0 : index
    %c0_0 = arith.constant 0 : index
    %c0_1 = arith.constant 0 : index
    %0 = vector.load %arg2[%c0, %c0_0, %c0_1] : memref<1x16x96xf32, #tpu.memory_space<vmem>>, vector<1x16x96xf32>
    %1 = vector.shape_cast %0 : vector<1x16x96xf32> to vector<16x96xf32>
    %c0_2 = arith.constant 0 : index
    %c0_3 = arith.constant 0 : index
    %2 = vector.load %arg3[%c0_2, %c0_3] : memref<16x4xi32, #tpu.memory_space<vmem>>, vector<16x4xi32>
    %3 = vector.extract_strided_slice %2 {offsets = [0, 0], sizes = [16, 1], strides = [1, 1]} : vector<16x4xi32> to vector<16x1xi32>
    %4 = vector.extract_strided_slice %2 {offsets = [0, 1], sizes = [16, 1], strides = [1, 1]} : vector<16x4xi32> to vector<16x1xi32>
    %5 = vector.extract_strided_slice %2 {offsets = [0, 2], sizes = [16, 1], strides = [1, 1]} : vector<16x4xi32> to vector<16x1xi32>
    %6 = vector.extract_strided_slice %2 {offsets = [0, 3], sizes = [16, 1], strides = [1, 1]} : vector<16x4xi32> to vector<16x1xi32>
    %c0_i32 = arith.constant 0 : i32
    %7 = vector.broadcast %c0_i32 : i32 to vector<16x1xi32>
    %8 = arith.cmpi sgt, %6, %7 : vector<16x1xi32>
    %9 = tpu.iota {dimensions = array<i32: 1>} : vector<16x96xi32>
    %c0_i32_4 = arith.constant 0 : i32
    %10 = vector.broadcast %c0_i32_4 : i32 to vector<16x96xi32>
    %11 = arith.cmpi sge, %9, %10 : vector<16x96xi32>
    %c32_i32 = arith.constant 32 : i32
    %12 = vector.broadcast %c32_i32 : i32 to vector<16x96xi32>
    %13 = arith.cmpi slt, %9, %12 : vector<16x96xi32>
    %14 = arith.andi %11, %13 : vector<16x96xi1>
    %cst = arith.constant -1.000000e+30 : f32
    %15 = vector.broadcast %cst : f32 to vector<16x96xf32>
    %16 = arith.select %14, %1, %15 : vector<16x96xi1>, vector<16x96xf32>
    %cst_5 = arith.constant dense<0xFF800000> : vector<16xf32>
    %17 = vector.multi_reduction <maximumf>, %16, %cst_5 [1] : vector<16x96xf32> to vector<16xf32>
    %18 = vector.shape_cast %17 : vector<16xf32> to vector<16x1xf32>
    %c32_i32_6 = arith.constant 32 : i32
    %19 = vector.broadcast %c32_i32_6 : i32 to vector<16x96xi32>
    %20 = arith.cmpi sge, %9, %19 : vector<16x96xi32>
    %c64_i32 = arith.constant 64 : i32
    %21 = vector.broadcast %c64_i32 : i32 to vector<16x96xi32>
    %22 = arith.cmpi slt, %9, %21 : vector<16x96xi32>
    %23 = arith.andi %20, %22 : vector<16x96xi1>
    %cst_7 = arith.constant -1.000000e+30 : f32
    %24 = vector.broadcast %cst_7 : f32 to vector<16x96xf32>
    %25 = arith.select %23, %1, %24 : vector<16x96xi1>, vector<16x96xf32>
    %cst_8 = arith.constant dense<0xFF800000> : vector<16xf32>
    %26 = vector.multi_reduction <maximumf>, %25, %cst_8 [1] : vector<16x96xf32> to vector<16xf32>
    %27 = vector.shape_cast %26 : vector<16xf32> to vector<16x1xf32>
    %c64_i32_9 = arith.constant 64 : i32
    %28 = vector.broadcast %c64_i32_9 : i32 to vector<16x96xi32>
    %29 = arith.cmpi sge, %9, %28 : vector<16x96xi32>
    %c96_i32 = arith.constant 96 : i32
    %30 = vector.broadcast %c96_i32 : i32 to vector<16x96xi32>
    %31 = arith.cmpi slt, %9, %30 : vector<16x96xi32>
    %32 = arith.andi %29, %31 : vector<16x96xi1>
    %cst_10 = arith.constant -1.000000e+30 : f32
    %33 = vector.broadcast %cst_10 : f32 to vector<16x96xf32>
    %34 = arith.select %32, %1, %33 : vector<16x96xi1>, vector<16x96xf32>
    %cst_11 = arith.constant dense<0xFF800000> : vector<16xf32>
    %35 = vector.multi_reduction <maximumf>, %34, %cst_11 [1] : vector<16x96xf32> to vector<16xf32>
    %36 = vector.shape_cast %35 : vector<16xf32> to vector<16x1xf32>
    %37 = arith.maximumf %18, %27 : vector<16x1xf32>
    %38 = arith.maximumf %37, %36 : vector<16x1xf32>
    %c96_i32_12 = arith.constant 96 : i32
    %39 = vector.broadcast %c96_i32_12 : i32 to vector<16x96xi32>
    %40 = arith.cmpi slt, %9, %39 : vector<16x96xi32>
    %41 = vector.broadcast %38 : vector<16x1xf32> to vector<16x96xf32>
    %42 = arith.subf %1, %41 : vector<16x96xf32>
    %cst_13 = arith.constant -1.000000e+30 : f32
    %43 = vector.broadcast %cst_13 : f32 to vector<16x96xf32>
    %44 = arith.select %40, %42, %43 : vector<16x96xi1>, vector<16x96xf32>
    %45 = math.exp %44 : vector<16x96xf32>
    %46 = vector.broadcast %3 : vector<16x1xi32> to vector<16x96xi32>
    %47 = arith.cmpi eq, %9, %46 : vector<16x96xi32>
    %c32_i32_14 = arith.constant 32 : i32
    %48 = vector.broadcast %c32_i32_14 : i32 to vector<16x1xi32>
    %49 = arith.addi %4, %48 : vector<16x1xi32>
    %50 = vector.broadcast %49 : vector<16x1xi32> to vector<16x96xi32>
    %51 = arith.cmpi eq, %9, %50 : vector<16x96xi32>
    %52 = arith.ori %47, %51 : vector<16x96xi1>
    %c64_i32_15 = arith.constant 64 : i32
    %53 = vector.broadcast %c64_i32_15 : i32 to vector<16x1xi32>
    %54 = arith.addi %5, %53 : vector<16x1xi32>
    %55 = vector.broadcast %54 : vector<16x1xi32> to vector<16x96xi32>
    %56 = arith.cmpi eq, %9, %55 : vector<16x96xi32>
    %57 = arith.ori %52, %56 : vector<16x96xi1>
    %cst_16 = arith.constant 0.000000e+00 : f32
    %58 = vector.broadcast %cst_16 : f32 to vector<16x96xf32>
    %59 = arith.select %57, %1, %58 : vector<16x96xi1>, vector<16x96xf32>
    %60 = tpu.iota {dimensions = array<i32: 0>} : vector<96x128xi32>
    %61 = tpu.iota {dimensions = array<i32: 1>} : vector<96x128xi32>
    %c32_i32_17 = arith.constant 32 : i32
    %62 = vector.broadcast %c32_i32_17 : i32 to vector<96x128xi32>
    %63 = arith.cmpi sge, %60, %62 : vector<96x128xi32>
    %64 = arith.extui %63 : vector<96x128xi1> to vector<96x128xi32>
    %c64_i32_18 = arith.constant 64 : i32
    %65 = vector.broadcast %c64_i32_18 : i32 to vector<96x128xi32>
    %66 = arith.cmpi sge, %60, %65 : vector<96x128xi32>
    %67 = arith.extui %66 : vector<96x128xi1> to vector<96x128xi32>
    %68 = arith.addi %64, %67 : vector<96x128xi32>
    %69 = arith.cmpi eq, %61, %68 : vector<96x128xi32>
    %c96_i32_19 = arith.constant 96 : i32
    %70 = vector.broadcast %c96_i32_19 : i32 to vector<96x128xi32>
    %71 = arith.cmpi slt, %60, %70 : vector<96x128xi32>
    %72 = arith.andi %69, %71 : vector<96x128xi1>
    %cst_20 = arith.constant 1.000000e+00 : f32
    %cst_21 = arith.constant 0.000000e+00 : f32
    %73 = vector.broadcast %cst_20 : f32 to vector<96x128xf32>
    %74 = vector.broadcast %cst_21 : f32 to vector<96x128xf32>
    %75 = arith.select %72, %73, %74 : vector<96x128xi1>, vector<96x128xf32>
    %cst_22 = arith.constant dense<0.000000e+00> : vector<16x128xf32>
    %76 = tpu.matmul %45, %75, %cst_22 {dimension_numbers = #tpu.dot_dimension_numbers<[1], [0], [0], [1], [0, 0, 1, 1], [], []>, precision = #tpu.contract_precision<fp32>} : vector<16x96xf32>, vector<96x128xf32>, vector<16x128xf32> -> vector<16x128xf32>
    %cst_23 = arith.constant dense<0.000000e+00> : vector<16x128xf32>
    %77 = tpu.matmul %59, %75, %cst_23 {dimension_numbers = #tpu.dot_dimension_numbers<[1], [0], [0], [1], [0, 0, 1, 1], [], []>, precision = #tpu.contract_precision<fp32>} : vector<16x96xf32>, vector<96x128xf32>, vector<16x128xf32> -> vector<16x128xf32>
    %78 = vector.extract_strided_slice %76 {offsets = [0, 0], sizes = [16, 1], strides = [1, 1]} : vector<16x128xf32> to vector<16x1xf32>
    %79 = vector.extract_strided_slice %76 {offsets = [0, 1], sizes = [16, 1], strides = [1, 1]} : vector<16x128xf32> to vector<16x1xf32>
    %80 = vector.extract_strided_slice %76 {offsets = [0, 2], sizes = [16, 1], strides = [1, 1]} : vector<16x128xf32> to vector<16x1xf32>
    %81 = vector.extract_strided_slice %77 {offsets = [0, 0], sizes = [16, 1], strides = [1, 1]} : vector<16x128xf32> to vector<16x1xf32>
    %82 = vector.extract_strided_slice %77 {offsets = [0, 1], sizes = [16, 1], strides = [1, 1]} : vector<16x128xf32> to vector<16x1xf32>
    %83 = vector.extract_strided_slice %77 {offsets = [0, 2], sizes = [16, 1], strides = [1, 1]} : vector<16x128xf32> to vector<16x1xf32>
    %84 = math.log %78 : vector<16x1xf32>
    %85 = math.log %79 : vector<16x1xf32>
    %86 = arith.addf %84, %85 : vector<16x1xf32>
    %87 = math.log %80 : vector<16x1xf32>
    %88 = arith.addf %86, %87 : vector<16x1xf32>
    %cst_24 = arith.constant 3.000000e+00 : f32
    %89 = vector.broadcast %cst_24 : f32 to vector<16x1xf32>
    %90 = arith.mulf %89, %38 : vector<16x1xf32>
    %91 = arith.addf %88, %90 : vector<16x1xf32>
    %92 = arith.addf %81, %82 : vector<16x1xf32>
    %93 = arith.addf %92, %83 : vector<16x1xf32>
    %94 = arith.subf %91, %93 : vector<16x1xf32>
    %95 = arith.cmpf oge, %81, %18 : vector<16x1xf32>
    %96 = arith.cmpf oge, %82, %27 : vector<16x1xf32>
    %97 = arith.cmpf oge, %83, %36 : vector<16x1xf32>
    %98 = arith.andi %96, %97 : vector<16x1xi1>
    %99 = arith.andi %95, %98 : vector<16x1xi1>
    %100 = arith.andi %8, %99 : vector<16x1xi1>
    %cst_25 = arith.constant 0.000000e+00 : f32
    %101 = vector.broadcast %cst_25 : f32 to vector<16x1xf32>
    %102 = arith.select %8, %94, %101 : vector<16x1xi1>, vector<16x1xf32>
    %103 = vector.shape_cast %102 : vector<16x1xf32> to vector<1x16x1xf32>
    %cst_26 = arith.constant dense<0.000000e+00> : vector<1xf32>
    %104 = vector.multi_reduction <add>, %103, %cst_26 [1, 2] : vector<1x16x1xf32> to vector<1xf32>
    %105 = vector.shape_cast %104 : vector<1xf32> to vector<1x1x1xf32>
    %106 = vector.extract %105[0, 0, 0] : f32 from vector<1x1x1xf32>
    %cst_27 = arith.constant 1.000000e+00 : f32
    %cst_28 = arith.constant 0.000000e+00 : f32
    %107 = vector.broadcast %cst_27 : f32 to vector<16x1xf32>
    %108 = vector.broadcast %cst_28 : f32 to vector<16x1xf32>
    %109 = arith.select %100, %107, %108 : vector<16x1xi1>, vector<16x1xf32>
    %110 = vector.shape_cast %109 : vector<16x1xf32> to vector<1x16x1xf32>
    %cst_29 = arith.constant dense<0.000000e+00> : vector<1xf32>
    %111 = vector.multi_reduction <add>, %110, %cst_29 [1, 2] : vector<1x16x1xf32> to vector<1xf32>
    %112 = vector.shape_cast %111 : vector<1xf32> to vector<1x1x1xf32>
    %113 = vector.extract %112[0, 0, 0] : f32 from vector<1x1x1xf32>
    %114 = tpu.iota {dimensions = array<i32: 2>} : vector<1x1x2x128xi32>
    %c0_i32_30 = arith.constant 0 : i32
    %115 = vector.broadcast %c0_i32_30 : i32 to vector<1x1x2x128xi32>
    %116 = arith.cmpi eq, %114, %115 : vector<1x1x2x128xi32>
    %117 = vector.broadcast %106 : f32 to vector<1x1x2x128xf32>
    %118 = vector.broadcast %113 : f32 to vector<1x1x2x128xf32>
    %119 = arith.select %116, %117, %118 : vector<1x1x2x128xi1>, vector<1x1x2x128xf32>
    %c0_31 = arith.constant 0 : index
    %c0_32 = arith.constant 0 : index
    %c0_33 = arith.constant 0 : index
    %c0_34 = arith.constant 0 : index
    %120 = vector.load %arg4[%c0_31, %c0_32, %c0_33, %c0_34] : memref<1x1x2x128xf32, #tpu.memory_space<vmem>>, vector<1x1x2x128xf32>
    tpu.vector_store %arg4[%c0_31, %c0_32, %c0_33, %c0_34], %119 {strides = array<i32>} : memref<1x1x2x128xf32, #tpu.memory_space<vmem>>, vector<1x1x2x128xf32>,
    return
  }
  func.func @transform_0(%arg0: i32, %arg1: i32) -> (i32, i32, i32) {
    %c0_i32 = arith.constant 0 : i32
    %c0_i32_0 = arith.constant 0 : i32
    return %arg0, %arg1, %c0_i32 : i32, i32, i32
  }
  func.func @transform_1(%arg0: i32, %arg1: i32) -> (i32, i32) {
    %c0_i32 = arith.constant 0 : i32
    %c0_i32_0 = arith.constant 0 : i32
    return %arg1, %c0_i32 : i32, i32
  }
  func.func @transform_2(%arg0: i32, %arg1: i32) -> (i32, i32, i32, i32) {
    %c0_i32 = arith.constant 0 : i32
    %c0_i32_0 = arith.constant 0 : i32
    %c0_i32_1 = arith.constant 0 : i32
    return %arg0, %arg1, %c0_i32, %c0_i32_0 : i32, i32, i32, i32
  }
}

</mosaic_0001>

<bundles_post_ra>
// kernel: _ce_correct_sums.1
= control target key start
LH: loop header
LB: loop body
LE: loop exit
PB: predicated region body
PF: predicated region fallthrough
CT: control target
= control target key end

     0   :  { %7 = vsyncpa [#allocation3], 0  ;;  %s3461_s0 = inlined_call_operand.hbm [shape: f32[2,16,96], index: 0, kind: input, shape index: {}]   ;;  %s3462_s1 = inlined_call_operand.vmem [shape: s32[16,4], index: 1, kind: input, shape index: {}]   ;;  %s3463_s2 = inlined_call_operand.vmem [shape: f32[2,1,2,128], index: 2, kind: output, shape index: {}]  }
   0x1   :  { %9 = vsyncpa [#allocation3 + $0x1], 0  ;;  %s2566_s9 = smov 0   ;;  %s2568_s10 = smov 0  }
   0x2   :  { %s2570_s11 = smov 0   ;;  %s2572_s12 = smov 0  }
   0x3   :  { %s2574_s13 = smov 0   ;;  %s2576_s14 = smov 0  }
   0x4 LB: > { %s1791_s15 = sadd.s32 4294967295, %s2537_s14   ;;  %s27_s16 = sadd.s32 1, %s2533_s13  ;;  %s2537_s14 = sphi %s2576_s14, %s15_s14   ;;  %s2533_s13 = sphi %s2574_s13, %s3475_s13   ;;  %s2529_s12 = sphi %s2572_s12, %s3474_s12   ;;  %s2525_s11 = sphi %s2570_s11, %s3473_s11   ;;  %s2521_s10 = sphi %s2568_s10, %s3472_s10   ;;  %s2517_s9 = sphi %s2566_s9, %s3471_s9  }
   0x5   : > { %p29_p0 = scmp.ge.s32.totalorder %s27_s16, 2  ;;  %s36_s17 = sadd.s32 1, %s2525_s11 }
   0x6   : > { %p43_p1 = scmp.ne.s32.totalorder %s2525_s11, %s2521_s10  ;;  %p44_p2 = scmp.eq.s32.totalorder %s2537_s14, 0 }
   0x7   : > { %s3477_s16 = smov (%p29_p0, %s27_s16), 0  ;;  %p49_p4 = scmp.ne.s32.totalorder %s2521_s10, %s2517_s9 }
   0x8   : > { %p2602_p3 = por %p44_p2, %p43_p1  ;;  %s31_s19 = ssub.s32 %s2533_s13, %s3477_s16 }
   0x9   : > { %p50_p5 = scmp.eq.s32.totalorder %s1791_s15, 0  ;;  %p34_p6 = scmp.eq.s32.totalorder %s31_s19, 0 }
   0xa   : > { %p2379_p8 = scmp.lt.s32.totalorder %s2537_s14, 2  ;;  %s136_s22 = sand.u32 1, %s2525_s11  }
   0xb   : > { %p2609_p7 = por %p50_p5, %p49_p4  ;;  %s1876_s23 = sshll.u32 %s2533_s13, 8 }
   0xc   : > { %s2615_s21 = scalar_select %p34_p6, %s2525_s11, %s36_s17  }
   0xd   : > { %s1796_s24 = sshll.u32 %s136_s22, 4  ;;  %s148_s27 = scalar_lea.hbm %s3461_s0, %s1876_s23 }
   0xe   : > { %s140_s28 = scalar_lea.vmem [#allocation2], %s1796_s24  ;;  %p2624_p9 = pnand %p2379_p8, %p2602_p3 }
   0xf   : > { %s149_s29 = sshll.u32 %s140_s28, 4  ;;  %s137_s3 = scalar_lea.sflag [#allocation3], %s136_s22  ;;  %s150_s29 = int_to_ptr.vmem [resolvable:$true] %s149_s29 }
  0x10   : > { %p2461_p10 = pneg %p2624_p9  ;;  %s2472_s4 = scalar_lea.vmem %s150_s29, 256 }
  0x11   : > { %p2473_p11 = scmp.ne.s32.totalorder %s150_s29, %s2472_s4  ;;  %s2539_s5 = smov [#allocation2]  }
  0x12   : > { %s2477_s6 = sshll.u32 %s2539_s5, 4  ;;  %s2478_s6 = int_to_ptr.vmem [resolvable:$false] %s2477_s6 }
  0x13   : > { %p2475_p12 = pnand %p2473_p11, %p2461_p10  ;;  %s2479_s7 = scalar_lea.vmem %s2478_s6, 512 }
  0x14   : > { %p2480_p0 = scmp.lt.s32.totalorder %s150_s29, %s2478_s6  ;;  %p2481_p1 = scmp.lt.s32.totalorder %s2479_s7, %s2472_s4 }
  0x15   : > { %p2476_p13 = pneg %p2475_p12 }
  0x16   : > { %p2482_p2 = por %p2481_p1, %p2480_p0 }
  0x18   : > { %p2483_p3 = pnand %p2482_p2, %p2476_p13 }
  0x1a   : > { %2486 = shalt.err (!%p2483_p3)
}
  0x1b   : > { %s2540_s8 = smov 128   ;;  %s2541_s9 = smov 8  }
  0x1c   : > { %2378 = dma.hbm_to_vmem [thread:$0]  (!%p2624_p9), %s148_s27, 256, %s150_s29, %s137_s3, %s2540_s8, %s2540_s8, %s2541_s9  }
  0x1d   : > { %p1799_p4 = scmp.ge.s32.totalorder %s2537_s14, 1  ;;  %p157_p5 = scmp.lt.s32.totalorder %s2537_s14, 3 }
  0x1f   : > { %p158_p6 = pnand %p1799_p4, %p157_p5 }
  0x20   : > { %s163_s15 = sand.u32 (!%p158_p6), 1, %s2521_s10  }
  0x21   : > { %161 = sbr.rel (%p158_p6) target bundleno = 1239 (0x4d7), region = 28  ;;  %s1800_s17 = sshll.u32 (!%p158_p6), %s163_s15, 4 }
  0x22   : > { %s164_s18 = scalar_lea.sflag (!%p158_p6), [#allocation3], %s163_s15  ;;  %s167_s19 = scalar_lea.vmem (!%p158_p6), [#allocation2], %s1800_s17 }
  0x26   : > { %2512 = dma.done.wait (%p2609_p7), %s164_s18, 256  }
  0x27   : > { %2514 = vsyncadd (%p2609_p7), %s164_s18, 4294967040  ;;  %v215_v0 = vlaneseq  ;;  %v2542_v1 = vmov 1   ;;  %v2543_v2 = vmov 0   ;;  %vm222_vm3 = vcmask 785408   ;;  %v2653_v5 = vld [vmem:[%s167_s19 + $0x8] sm:$0xff]  ;;  %v2655_v6 = vld [vmem:[%s167_s19] sm:$0xff] }
  0x28   : > { %2440 = vset.pattern.permute.xlu1 %v2542_v1  ;;  %2439 = vset.pattern.permute.xlu0 %v2543_v2  ;;  %v2544_v19 = vmov 0.0   ;;  %v211_v25 = vld [vmem:[%s3462_s1] sm:$0xff]  ;;  %v2719_v33 = vld [vmem:[%s3462_s1 + $0x8] sm:$0xff]  ;;  %v2545_v34 = vmov 1.0   ;;  %v2546_v41 = vmov 2   ;;  %s2547_s25 = smov 127  }
  0x29   : > { %v2642_v3 = vand.u32 127, %v215_v0  ;;  %v271_v28 = vadd.s32 32, %v211_v25  ;;  %v272_v37 = vadd.s32 32, %v2719_v33  ;;  %v283_v40 = vadd.s32 64, %v211_v25  ;;  %s2548_s26 = smov 126   ;;  %s2549_s27 = smov 3  }
  0x2a   : > { %v284_v42 = vadd.s32 64, %v2719_v33  ;;  %s2550_s30 = smov 125   ;;  %p202_p7 = scmp.lt.s32.totalorder %s2529_s12, 1 }
  0x2b   : > { %vm218_vm0 = vcmp.lt.s32.totalorder %v2642_v3, 32  ;;  %vm229_vm1 = vcmp.ge.s32.totalorder %v2642_v3, 32  ;;  %vm230_vm2 = vcmp.lt.s32.totalorder %v2642_v3, 64  ;;  %vm240_vm5 = vcmp.ge.s32.totalorder %v2642_v3, 64 }
  0x2c   : > { %vm2647_vm4 = vmand %vm229_vm1, %vm230_vm2  ;;  %vm241_vm6 = vcmp.lt.s32.totalorder %v2642_v3, 96  ;;  %v221_v7 = vsel %vm218_vm0, %v2653_v5, -1e+30  ;;  %v220_v8 = vsel %vm218_vm0, %v2655_v6, -1e+30  ;;  %vm378_vm8 = vcmp.eq.s32.totalorder %v2642_v3, 2 }
  0x2d   : > { %v233_v9 = vsel %vm2647_vm4, %v2653_v5, -1e+30  ;;  %v226_v10 = vsel %vm222_vm3, %v221_v7, -inf  ;;  %v223_v11 = vsel %vm222_vm3, %v220_v8, -inf  ;;  %v232_v12 = vsel %vm2647_vm4, %v2655_v6, -1e+30  ;;  %vm242_vm7 = vmand %vm240_vm5, %vm241_vm6  ;;  %2045 = vmatprep.subr.msk.mxu0 %vm378_vm8, %v2545_v34 }
  0x2e   : > { %227 = vmax.xlane.f32.xlu1 %v226_v10  ;;  %224 = vmax.xlane.f32.xlu0 %v223_v11  ;;  %v237_v13 = vsel %vm222_vm3, %v233_v9, -inf  ;;  %v234_v14 = vsel %vm222_vm3, %v232_v12, -inf  ;;  %v244_v15 = vsel %vm242_vm7, %v2653_v5, -1e+30  ;;  %v243_v16 = vsel %vm242_vm7, %v2655_v6, -1e+30 }
  0x2f   : > { %v248_v17 = vsel %vm222_vm3, %v244_v15, -inf  ;;  %v245_v18 = vsel %vm222_vm3, %v243_v16, -inf  ;;  %v414_v20 = vsel %vm378_vm8, 1.0, %v2544_v19  ;;  %vm374_vm9 = vcmp.eq.s32.totalorder %v2642_v3, 1  ;;  %2046 = vmatpush3.msk.msra.mxu0 %vm378_vm8, %v2545_v34  ;;  %s3479_s12 = smov (!%p202_p7, %s2529_s12), 1 }
  0x30   : > { %v2679_v21 = vsub.f32 %v414_v20, %v414_v20  ;;  %v410_v26 = vsel %vm374_vm9, 1.0, %v2544_v19  ;;  %vm370_vm10 = vcmp.eq.s32.totalorder %v2642_v3, 0  ;;  %2047 = vmatprep.subr.msk.mxu0 %vm378_vm8, %v2545_v34  ;;  %s1801_s3 = sshll.u32 %s3479_s12, 1 }
  0x31   : > { %v2696_v27 = vsub.f32 %v410_v26, %v410_v26  ;;  %v406_v32 = vsel %vm370_vm10, 1.0, %v2544_v19  ;;  %2048 = vmatpush3.msk.msra.mxu0 %vm378_vm8, %v2545_v34  ;;  %s208_s7 = scalar_lea.vmem %s3463_s2, %s1801_s3 }
  0x32   : > { %238 = vmax.xlane.f32.xlu1 %v237_v13  ;;  %235 = vmax.xlane.f32.xlu0 %v234_v14  ;;  %v2682_v22 = vand.u32 4294901760, %v2679_v21  ;;  %v2725_v35 = vsub.f32 %v406_v32, %v406_v32 }
  0x33   : > { %v2701_v29 = vand.u32 4294901760, %v2696_v27  ;;  %2049 = vmatprep.subr.msk.mxu0 %vm378_vm8, %v2545_v34 }
  0x34   : > { %v520_v23 = vsub.f32 %v2679_v21, %v2682_v22  ;;  %v2736_v36 = vand.u32 4294901760, %v2725_v35  ;;  %2050 = vmatpush3.msk.msra.mxu0 %vm378_vm8, %v2545_v34 }
  0x35   : > { %v544_v30 = vsub.f32 %v2696_v27, %v2701_v29  ;;  %2051 = vmatprep.subr.msk.mxu0 %vm378_vm8, %v2545_v34 }
  0x36   : > { %249 = vmax.xlane.f32.xlu1 %v248_v17  ;;  %246 = vmax.xlane.f32.xlu0 %v245_v18  ;;  %v2687_v24 = vand.u32 4294901760, %v520_v23  ;;  %v568_v38 = vsub.f32 %v2725_v35, %v2736_v36 }
  0x37   : > { %v2710_v31 = vand.u32 4294901760, %v544_v30  ;;  %2052 = vmatpush3.msk.msra.mxu0 %vm378_vm8, %v2545_v34 }
  0x38   : > { %2072 = vmatprep.subr.mxu1 %v2687_v24  ;;  %v2756_v39 = vand.u32 4294901760, %v568_v38  ;;  %2053 = vmatprep.subr.msk.mxu0 %vm374_vm9, %v2545_v34 }
  0x39   : > { %2073 = vmatpush3.msra.mxu1 %v2687_v24  ;;  %2054 = vmatpush3.msk.msra.mxu0 %vm374_vm9, %v2545_v34 }
  0x3a   : > { %2074 = vmatprep.subr.mxu1 %v2687_v24  ;;  %2055 = vmatprep.subr.msk.mxu0 %vm374_vm9, %v2545_v34 }
  0x3b   : > { %2075 = vmatpush3.msra.mxu1 %v2687_v24  ;;  %2056 = vmatpush3.msk.msra.mxu0 %vm374_vm9, %v2545_v34 }
  0x3c   : > { %2076 = vmatprep.subr.mxu1 %v2687_v24  ;;  %2057 = vmatprep.subr.msk.mxu0 %vm374_vm9, %v2545_v34 }
  0x3d   : > { %2077 = vmatpush3.msra.mxu1 %v2687_v24  ;;  %2058 = vmatpush3.msk.msra.mxu0 %vm374_vm9, %v2545_v34 }
  0x3e   : > { %2078 = vmatprep.subr.mxu1 %v2687_v24  ;;  %2059 = vmatprep.subr.msk.mxu0 %vm374_vm9, %v2545_v34 }
  0x3f   : > { %2079 = vmatpush3.msra.mxu1 %v2687_v24  ;;  %2060 = vmatpush3.msk.msra.mxu0 %vm374_vm9, %v2545_v34 }
  0x40   : > { %2080 = vmatprep.subr.mxu1 %v2710_v31  ;;  %2061 = vmatprep.subr.msk.mxu0 %vm370_vm10, %v2545_v34 }
  0x41   : > { %2081 = vmatpush3.msra.mxu1 %v2710_v31  ;;  %2062 = vmatpush3.msk.msra.mxu0 %vm370_vm10, %v2545_v34 }
  0x42   : > { %2082 = vmatprep.subr.mxu1 %v2710_v31  ;;  %2063 = vmatprep.subr.msk.mxu0 %vm370_vm10, %v2545_v34 }
  0x43   : > { %2083 = vmatpush3.msra.mxu1 %v2710_v31  ;;  %2064 = vmatpush3.msk.msra.mxu0 %vm370_vm10, %v2545_v34 }
  0x44   : > { %2084 = vmatprep.subr.mxu1 %v2710_v31  ;;  %2065 = vmatprep.subr.msk.mxu0 %vm370_vm10, %v2545_v34 }
  0x45   : > { %2085 = vmatpush3.msra.mxu1 %v2710_v31  ;;  %2066 = vmatpush3.msk.msra.mxu0 %vm370_vm10, %v2545_v34 }
  0x46   : > { %2086 = vmatprep.subr.mxu1 %v2710_v31  ;;  %2067 = vmatprep.subr.msk.mxu0 %vm370_vm10, %v2545_v34 }
  0x47   : > { %274 = vperm.xlu1 %2440, %v271_v28   ;;  %2087 = vmatpush3.msra.mxu1 %v2710_v31 }
  0x48   : > { %2088 = vmatprep.subr.mxu1 %v2756_v39  ;;  %2068 = vmatpush3.msk.msra.mxu0 %vm370_vm10, %v2545_v34 }
  0x49   : > { %2089 = vmatpush3.msra.mxu1 %v2756_v39  ;;  %2099 = vmatprep.subr.mxu0 %v2679_v21 }
  0x4a   : > { %2090 = vmatprep.subr.mxu1 %v2756_v39 }
  0x4b   : > { %2441 = vset.pattern.permute.xlu1 %v2543_v2  ;;  %2091 = vmatpush3.msra.mxu1 %v2756_v39 }
  0x4c   : > { %267 = vperm.xlu1 %2441, %v2719_v33   ;;  %264 = vperm.xlu0 %2439, %v211_v25  }
  0x4d   : > { %2092 = vmatprep.subr.mxu1 %v2756_v39 }
  0x4e   : > { %2093 = vmatpush3.msra.mxu1 %v2756_v39 }
  0x4f   : > { %2094 = vmatprep.subr.mxu1 %v2756_v39 }
  0x50   : > { %2442 = vset.pattern.permute.xlu1 %v2542_v1  ;;  %2095 = vmatpush3.msra.mxu1 %v2756_v39 }
  0x51   : > { %277 = vperm.xlu1 %2442, %v272_v37   ;;  %2126 = vmatprep.subr.msk.mxu1 %vm378_vm8, %v2545_v34 }
  0x52   : > { %2449 = vset.pattern.permute.xlu0 %v2546_v41 }
  0x55   : > { %2443 = vset.pattern.permute.xlu1 %v2546_v41 }
  0x56   : > { %286 = vperm.xlu1 %2443, %v283_v40  }
  0x5a   : > { %289 = vperm.xlu1 %2443, %v284_v42  }
  0xb7   : > { %v2827_v43 = vpop.xlane.xlu1 %227  ;;  %v2829_v44 = vpop.xlane.xlu0 %224 }
  0xbb   : > { %v2831_v45 = vpop.xlane.xlu1 %238  ;;  %v2833_v46 = vpop.xlane.xlu0 %235 }
  0xbc   : > { %v252_v47 = vmax.f32 %v2827_v43, %v2831_v45  ;;  %v251_v48 = vmax.f32 %v2829_v44, %v2833_v46 }
  0xbf   : > { %v2839_v49 = vpop.xlane.xlu1 %249  ;;  %v2841_v50 = vpop.xlane.xlu0 %246 }
  0xc0   : > { %v2844_v51 = vmax.f32 %v252_v47, %v2839_v49  ;;  %v2847_v52 = vmax.f32 %v251_v48, %v2841_v50 }
  0xc2   : > { %v256_v53 = vsub.f32 %v2653_v5, %v2844_v51  ;;  %v255_v54 = vsub.f32 %v2655_v6, %v2847_v52 }
  0xc3   : > { %v275_v14 = vpop.permute.xlu1 %274 }
  0xc4   : > { %v258_v55 = vsel %vm241_vm6, %v256_v53, -1e+30  ;;  %v257_v56 = vsel %vm241_vm6, %v255_v54, -1e+30  ;;  %vm279_vm11 = vcmp.eq.s32.totalorder %v2642_v3, %v275_v14 }
  0xc5   : > { %v261_v57 = vmul.f32 1.442695, %v258_v55  ;;  %v259_v58 = vmul.f32 1.442695, %v257_v56 }
  0xc7   : > { %2450 = vpow2.f32 %v261_v57  ;;  %v2924_v15 = vpop.permute.xlu1 %267  ;;  %v265_v17 = vpop.permute.xlu0 %264 }
  0xc8   : > { %2452 = vpow2.f32 %v259_v58  ;;  %vm269_vm12 = vcmp.eq.s32.totalorder %v2642_v3, %v265_v17  ;;  %vm270_vm0 = vcmp.eq.s32.totalorder %v2642_v3, %v2924_v15 }
  0xc9   : > { %vm281_vm13 = vmor %vm269_vm12, %vm279_vm11 }
  0xcc   : > { %v2950_v16 = vpop.permute.xlu1 %277 }
  0xcd   : > { %vm280_vm1 = vcmp.eq.s32.totalorder %v2642_v3, %v2950_v16 }
  0xce   : > { %vm282_vm2 = vmor %vm270_vm0, %vm280_vm1 }
  0xd1   : > { %v287_v18 = vpop.permute.xlu1 %286 }
  0xd2   : > { %vm291_vm14 = vcmp.eq.s32.totalorder %v2642_v3, %v287_v18 }
  0xd3   : > { %vm293_vm15 = vmor %vm281_vm13, %vm291_vm14 }
  0xd4   : > { %v2451_v59 = vpop.eup %2450  ;;  %v295_v20 = vsel %vm293_vm15, %v2655_v6, 0.0 }
  0xd5   : > { %v2453_v60 = vpop.eup %2452  ;;  %v422_v61 = vsel %vm222_vm3, %v2451_v59, 0  ;;  %v985_v6 = vsel %vm222_vm3, %v295_v20, 0  ;;  %v290_v28 = vpop.permute.xlu1 %289 }
  0xd6   : > { %v419_v62 = vsel %vm222_vm3, %v2453_v60, 0  ;;  %v2859_v63 = vand.u32 4294901760, %v422_v61  ;;  %v3036_v23 = vand.u32 4294901760, %v985_v6  ;;  %vm292_vm4 = vcmp.eq.s32.totalorder %v2642_v3, %v290_v28 }
  0xd7   : > { %v2861_v1 = vand.u32 4294901760, %v419_v62  ;;  %vm3092_vm5 = vmor %vm282_vm2, %vm292_vm4 }
  0xd8   : > { %v2864_v4 = vsub.f32 %v422_v61, %v2859_v63  ;;  %v3051_v25 = vsub.f32 %v985_v6, %v3036_v23  ;;  %v296_v38 = vsel %vm3092_vm5, %v2653_v5, 0.0 }
  0xd9   : > { %2096 = vmatprep.mubr.f32.mxu1 %v2861_v1  ;;  %v490_v7 = vsub.f32 %v419_v62, %v2861_v1 }
  0xda   : > { %2097 = vmatmul.mubr.f32.vlgmr.msra.gmra.mxu1 %v2859_v63  ;;  %v501_v8 = vand.u32 4294901760, %v2864_v4  ;;  %v1057_v26 = vand.u32 4294901760, %v3051_v25 }
  0xdb   : > { %2127 = vmatpush3.msk.msra.mxu1 %vm378_vm8, %v2545_v34  ;;  %v491_v9 = vand.u32 4294901760, %v490_v7 }
  0xdc   : > { %2128 = vmatprep.subr.msk.mxu1 %vm378_vm8, %v2545_v34  ;;  %v502_v10 = vsub.f32 %v2864_v4, %v501_v8  ;;  %v1058_v30 = vsub.f32 %v3051_v25, %v1057_v26 }
  0xdd   : > { %2129 = vmatpush3.msk.msra.mxu1 %vm378_vm8, %v2545_v34  ;;  %2150 = vmatprep.mubr.f32.mxu1 %v491_v9  ;;  %v492_v11 = vsub.f32 %v490_v7, %v491_v9 }
  0xde   : > { %2130 = vmatprep.subr.msk.mxu1 %vm378_vm8, %v2545_v34  ;;  %v503_v12 = vand.u32 4294901760, %v502_v10  ;;  %v1059_v37 = vand.u32 4294901760, %v1058_v30 }
  0xdf   : > { %2131 = vmatpush3.msk.msra.mxu1 %vm378_vm8, %v2545_v34  ;;  %v493_v13 = vand.u32 4294901760, %v492_v11 }
  0xe0   : > { %2132 = vmatprep.subr.msk.mxu1 %vm378_vm8, %v2545_v34 }
  0xe1   : > { %2133 = vmatpush3.msk.msra.mxu1 %vm378_vm8, %v2545_v34  ;;  %2069 = vmatprep.mubr.f32.mxu0 %v493_v13 }
  0xe2   : > { %2134 = vmatprep.subr.msk.mxu1 %vm374_vm9, %v2545_v34  ;;  %2070 = vmatmul.mubr.f32.vlgmr.msra.gmra.mxu0 %v503_v12 }
  0xe3   : > { %2100 = vmatpush3.msra.mxu0 %v2679_v21  ;;  %2135 = vmatpush3.msk.msra.mxu1 %vm374_vm9, %v2545_v34 }
  0xe4   : > { %2101 = vmatprep.subr.mxu0 %v2679_v21  ;;  %2123 = vmatprep.mubr.f32.mxu0 %v490_v7 }
  0xe5   : > { %2136 = vmatprep.subr.msk.mxu1 %vm374_vm9, %v2545_v34  ;;  %2102 = vmatpush3.msra.mxu0 %v2679_v21 }
  0xe6   : > { %2137 = vmatpush3.msk.msra.mxu1 %vm374_vm9, %v2545_v34  ;;  %2103 = vmatprep.subr.mxu0 %v2679_v21 }
  0xe7   : > { %2138 = vmatprep.subr.msk.mxu1 %vm374_vm9, %v2545_v34  ;;  %2104 = vmatpush3.msra.mxu0 %v2679_v21 }
  0xe8   : > { %2139 = vmatpush3.msk.msra.mxu1 %vm374_vm9, %v2545_v34  ;;  %2105 = vmatprep.subr.mxu0 %v2679_v21 }
  0xe9   : > { %2140 = vmatprep.subr.msk.mxu1 %vm374_vm9, %v2545_v34  ;;  %2106 = vmatpush3.msra.mxu0 %v2679_v21 }
  0xea   : > { %2141 = vmatpush3.msk.msra.mxu1 %vm374_vm9, %v2545_v34  ;;  %2107 = vmatprep.subr.mxu0 %v2696_v27 }
  0xeb   : > { %2142 = vmatprep.subr.msk.mxu1 %vm370_vm10, %v2545_v34  ;;  %2108 = vmatpush3.msra.mxu0 %v2696_v27 }
  0xec   : > { %2143 = vmatpush3.msk.msra.mxu1 %vm370_vm10, %v2545_v34  ;;  %2109 = vmatprep.subr.mxu0 %v2696_v27 }
  0xed   : > { %2144 = vmatprep.subr.msk.mxu1 %vm370_vm10, %v2545_v34  ;;  %2110 = vmatpush3.msra.mxu0 %v2696_v27 }
  0xee   : > { %2145 = vmatpush3.msk.msra.mxu1 %vm370_vm10, %v2545_v34  ;;  %2111 = vmatprep.subr.mxu0 %v2696_v27 }
  0xef   : > { %2146 = vmatprep.subr.msk.mxu1 %vm370_vm10, %v2545_v34  ;;  %2112 = vmatpush3.msra.mxu0 %v2696_v27 }
  0xf0   : > { %2147 = vmatpush3.msk.msra.mxu1 %vm370_vm10, %v2545_v34  ;;  %2113 = vmatprep.subr.mxu0 %v2696_v27 }
  0xf1   : > { %2148 = vmatprep.subr.msk.mxu1 %vm370_vm10, %v2545_v34  ;;  %2114 = vmatpush3.msra.mxu0 %v2696_v27 }
  0xf2   : > { %2149 = vmatpush3.msk.msra.mxu1 %vm370_vm10, %v2545_v34  ;;  %2115 = vmatprep.subr.mxu0 %v2725_v35 }
  0xf3   : > { %2151 = vmatmul.mubr.f32.vlgmr.msra.gmra.mxu1 %v501_v8  ;;  %2180 = vmatprep.subr.msk.mxu1 %vm378_vm8, %v2545_v34 }
  0xf4   : > { %2116 = vmatpush3.msra.mxu0 %v2725_v35  ;;  %2181 = vmatpush3.msk.msra.mxu1 %vm378_vm8, %v2545_v34 }
  0xf5   : > { %2204 = vmatprep.mubr.f32.mxu1 %v2861_v1  ;;  %2117 = vmatprep.subr.mxu0 %v2725_v35 }
  0xf6   : > { %2182 = vmatprep.subr.msk.mxu1 %vm378_vm8, %v2545_v34  ;;  %2118 = vmatpush3.msra.mxu0 %v2725_v35 }
  0xf7   : > { %2183 = vmatpush3.msk.msra.mxu1 %vm378_vm8, %v2545_v34  ;;  %2119 = vmatprep.subr.mxu0 %v2725_v35 }
  0xf8   : > { %2184 = vmatprep.subr.msk.mxu1 %vm378_vm8, %v2545_v34  ;;  %2120 = vmatpush3.msra.mxu0 %v2725_v35 }
  0xf9   : > { %2185 = vmatpush3.msk.msra.mxu1 %vm378_vm8, %v2545_v34  ;;  %2121 = vmatprep.subr.mxu0 %v2725_v35 }
  0xfa   : > { %2186 = vmatprep.subr.msk.mxu1 %vm378_vm8, %v2545_v34  ;;  %2122 = vmatpush3.msra.mxu0 %v2725_v35 }
  0xfb   : > { %2187 = vmatpush3.msk.msra.mxu1 %vm378_vm8, %v2545_v34  ;;  %2124 = vmatmul.mubr.f32.vlgmr.msra.gmra.mxu0 %v2864_v4 }
  0xfc   : > { %2153 = vmatprep.subr.mxu0 %v2682_v22  ;;  %2188 = vmatprep.subr.msk.mxu1 %vm374_vm9, %v2545_v34 }
  0xfd   : > { %2154 = vmatpush3.msra.mxu0 %v2682_v22  ;;  %2177 = vmatprep.mubr.f32.mxu0 %v2861_v1 }
  0xfe   : > { %2189 = vmatpush3.msk.msra.mxu1 %vm374_vm9, %v2545_v34  ;;  %2155 = vmatprep.subr.mxu0 %v2682_v22 }
  0xff   : > { %2190 = vmatprep.subr.msk.mxu1 %vm374_vm9, %v2545_v34  ;;  %2156 = vmatpush3.msra.mxu0 %v2682_v22 }
 0x100   : > { %2191 = vmatpush3.msk.msra.mxu1 %vm374_vm9, %v2545_v34  ;;  %2157 = vmatprep.subr.mxu0 %v2682_v22 }
 0x101   : > { %2192 = vmatprep.subr.msk.mxu1 %vm374_vm9, %v2545_v34  ;;  %2158 = vmatpush3.msra.mxu0 %v2682_v22 }
 0x102   : > { %2193 = vmatpush3.msk.msra.mxu1 %vm374_vm9, %v2545_v34  ;;  %2159 = vmatprep.subr.mxu0 %v2682_v22 }
 0x103   : > { %2194 = vmatprep.subr.msk.mxu1 %vm374_vm9, %v2545_v34  ;;  %2160 = vmatpush3.msra.mxu0 %v2682_v22 }
 0x104   : > { %2195 = vmatpush3.msk.msra.mxu1 %vm374_vm9, %v2545_v34  ;;  %2161 = vmatprep.subr.mxu0 %v2701_v29 }
 0x105   : > { %2196 = vmatprep.subr.msk.mxu1 %vm370_vm10, %v2545_v34  ;;  %2162 = vmatpush3.msra.mxu0 %v2701_v29 }
 0x106   : > { %2197 = vmatpush3.msk.msra.mxu1 %vm370_vm10, %v2545_v34  ;;  %2163 = vmatprep.subr.mxu0 %v2701_v29 }
 0x107   : > { %2198 = vmatprep.subr.msk.mxu1 %vm370_vm10, %v2545_v34  ;;  %2164 = vmatpush3.msra.mxu0 %v2701_v29 }
 0x108   : > { %2199 = vmatpush3.msk.msra.mxu1 %vm370_vm10, %v2545_v34  ;;  %2165 = vmatprep.subr.mxu0 %v2701_v29 }
 0x109   : > { %2200 = vmatprep.subr.msk.mxu1 %vm370_vm10, %v2545_v34  ;;  %2166 = vmatpush3.msra.mxu0 %v2701_v29 }
 0x10a   : > { %2201 = vmatpush3.msk.msra.mxu1 %vm370_vm10, %v2545_v34  ;;  %2167 = vmatprep.subr.mxu0 %v2701_v29 }
 0x10b   : > { %2202 = vmatprep.subr.msk.mxu1 %vm370_vm10, %v2545_v34  ;;  %2168 = vmatpush3.msra.mxu0 %v2701_v29 }
 0x10c   : > { %2203 = vmatpush3.msk.msra.mxu1 %vm370_vm10, %v2545_v34  ;;  %2169 = vmatprep.subr.mxu0 %v2736_v36 }
 0x10d   : > { %2205 = vmatmul.mubr.f32.vlgmr.msra.gmra.mxu1 %v2859_v63  ;;  %2234 = vmatprep.subr.mxu1 %v2687_v24 }
 0x10e   : > { %2170 = vmatpush3.msra.mxu0 %v2736_v36  ;;  %2235 = vmatpush3.msra.mxu1 %v2687_v24 }
 0x10f   : > { %2171 = vmatprep.subr.mxu0 %v2736_v36  ;;  %2236 = vmatprep.subr.mxu1 %v2687_v24 }
 0x110   : > { %2172 = vmatpush3.msra.mxu0 %v2736_v36  ;;  %2237 = vmatpush3.msra.mxu1 %v2687_v24 }
 0x111   : > { %2173 = vmatprep.subr.mxu0 %v2736_v36  ;;  %2238 = vmatprep.subr.mxu1 %v2687_v24 }
 0x112   : > { %2174 = vmatpush3.msra.mxu0 %v2736_v36  ;;  %2239 = vmatpush3.msra.mxu1 %v2687_v24 }
 0x113   : > { %2175 = vmatprep.subr.mxu0 %v2736_v36  ;;  %2240 = vmatprep.subr.mxu1 %v2687_v24 }
 0x114   : > { %2176 = vmatpush3.msra.mxu0 %v2736_v36  ;;  %2241 = vmatpush3.msra.mxu1 %v2687_v24  ;;  %v988_v24 = vsel %vm222_vm3, %v296_v38, 0 }
 0x115   : > { %2258 = vmatprep.mubr.f32.mxu1 %v3036_v23  ;;  %2178 = vmatmul.mubr.f32.vlgmr.msra.gmra.mxu0 %v2859_v63  ;;  %v3131_v5 = vand.u32 4294901760, %v988_v24 }
 0x116   : > { %2207 = vmatprep.subr.msk.mxu0 %vm378_vm8, %v2545_v34  ;;  %2242 = vmatprep.subr.mxu1 %v2710_v31 }
 0x117   : > { %2208 = vmatpush3.msk.msra.mxu0 %vm378_vm8, %v2545_v34  ;;  %2243 = vmatpush3.msra.mxu1 %v2710_v31  ;;  %v3150_v40 = vsub.f32 %v988_v24, %v3131_v5 }
 0x118   : > { %2209 = vmatprep.subr.msk.mxu0 %vm378_vm8, %v2545_v34  ;;  %2244 = vmatprep.subr.mxu1 %v2710_v31 }
 0x119   : > { %2210 = vmatpush3.msk.msra.mxu0 %vm378_vm8, %v2545_v34  ;;  %2231 = vmatprep.mubr.f32.mxu0 %v1059_v37 }
 0x11a   : > { %2245 = vmatpush3.msra.mxu1 %v2710_v31  ;;  %2211 = vmatprep.subr.msk.mxu0 %vm378_vm8, %v2545_v34 }
 0x11b   : > { %2246 = vmatprep.subr.mxu1 %v2710_v31  ;;  %2212 = vmatpush3.msk.msra.mxu0 %vm378_vm8, %v2545_v34 }
 0x11c   : > { %2247 = vmatpush3.msra.mxu1 %v2710_v31  ;;  %2213 = vmatprep.subr.msk.mxu0 %vm378_vm8, %v2545_v34 }
 0x11d   : > { %2248 = vmatprep.subr.mxu1 %v2710_v31  ;;  %2214 = vmatpush3.msk.msra.mxu0 %vm378_vm8, %v2545_v34 }
 0x11e   : > { %2249 = vmatpush3.msra.mxu1 %v2710_v31  ;;  %2215 = vmatprep.subr.msk.mxu0 %vm374_vm9, %v2545_v34  ;;  %v1067_v31 = vand.u32 4294901760, %v3150_v40 }
 0x11f   : > { %2250 = vmatprep.subr.mxu1 %v2756_v39  ;;  %2216 = vmatpush3.msk.msra.mxu0 %vm374_vm9, %v2545_v34 }
 0x120   : > { %2251 = vmatpush3.msra.mxu1 %v2756_v39  ;;  %2217 = vmatprep.subr.msk.mxu0 %vm374_vm9, %v2545_v34 }
 0x121   : > { %2252 = vmatprep.subr.mxu1 %v2756_v39  ;;  %2218 = vmatpush3.msk.msra.mxu0 %vm374_vm9, %v2545_v34 }
 0x122   : > { %2253 = vmatpush3.msra.mxu1 %v2756_v39  ;;  %2219 = vmatprep.subr.msk.mxu0 %vm374_vm9, %v2545_v34 }
 0x123   : > { %2254 = vmatprep.subr.mxu1 %v2756_v39  ;;  %2220 = vmatpush3.msk.msra.mxu0 %vm374_vm9, %v2545_v34 }
 0x124   : > { %2255 = vmatpush3.msra.mxu1 %v2756_v39  ;;  %2221 = vmatprep.subr.msk.mxu0 %vm374_vm9, %v2545_v34 }
 0x125   : > { %2256 = vmatprep.subr.mxu1 %v2756_v39  ;;  %2222 = vmatpush3.msk.msra.mxu0 %vm374_vm9, %v2545_v34 }
 0x126   : > { %2257 = vmatpush3.msra.mxu1 %v2756_v39  ;;  %2223 = vmatprep.subr.msk.mxu0 %vm370_vm10, %v2545_v34  ;;  %v1068_v39 = vsub.f32 %v3150_v40, %v1067_v31 }
 0x127   : > { %2259 = vmatmul.mubr.f32.vlgmr.msra.gmra.mxu1 %v3131_v5  ;;  %2288 = vmatprep.subr.msk.mxu1 %vm378_vm8, %v2545_v34 }
 0x128   : > { %2224 = vmatpush3.msk.msra.mxu0 %vm370_vm10, %v2545_v34  ;;  %2289 = vmatpush3.msk.msra.mxu1 %vm378_vm8, %v2545_v34  ;;  %v1069_v41 = vand.u32 4294901760, %v1068_v39 }
 0x129   : > { %2312 = vmatprep.mubr.f32.mxu1 %v1057_v26  ;;  %2225 = vmatprep.subr.msk.mxu0 %vm370_vm10, %v2545_v34 }
 0x12a   : > { %2290 = vmatprep.subr.msk.mxu1 %vm378_vm8, %v2545_v34  ;;  %2226 = vmatpush3.msk.msra.mxu0 %vm370_vm10, %v2545_v34 }
 0x12b   : > { %2291 = vmatpush3.msk.msra.mxu1 %vm378_vm8, %v2545_v34  ;;  %2227 = vmatprep.subr.msk.mxu0 %vm370_vm10, %v2545_v34 }
 0x12c   : > { %2292 = vmatprep.subr.msk.mxu1 %vm378_vm8, %v2545_v34  ;;  %2228 = vmatpush3.msk.msra.mxu0 %vm370_vm10, %v2545_v34 }
 0x12d   : > { %2293 = vmatpush3.msk.msra.mxu1 %vm378_vm8, %v2545_v34  ;;  %2229 = vmatprep.subr.msk.mxu0 %vm370_vm10, %v2545_v34 }
 0x12e   : > { %2294 = vmatprep.subr.msk.mxu1 %vm378_vm8, %v2545_v34  ;;  %2230 = vmatpush3.msk.msra.mxu0 %vm370_vm10, %v2545_v34 }
 0x12f   : > { %2295 = vmatpush3.msk.msra.mxu1 %vm378_vm8, %v2545_v34  ;;  %2232 = vmatmul.mubr.f32.vlgmr.msra.gmra.mxu0 %v1069_v41 }
 0x130   : > { %2261 = vmatprep.subr.mxu0 %v2679_v21  ;;  %2296 = vmatprep.subr.msk.mxu1 %vm374_vm9, %v2545_v34 }
 0x131   : > { %2262 = vmatpush3.msra.mxu0 %v2679_v21  ;;  %2285 = vmatprep.mubr.f32.mxu0 %v3051_v25 }
 0x132   : > { %2297 = vmatpush3.msk.msra.mxu1 %vm374_vm9, %v2545_v34  ;;  %2263 = vmatprep.subr.mxu0 %v2679_v21 }
 0x133   : > { %2298 = vmatprep.subr.msk.mxu1 %vm374_vm9, %v2545_v34  ;;  %2264 = vmatpush3.msra.mxu0 %v2679_v21 }
 0x134   : > { %2299 = vmatpush3.msk.msra.mxu1 %vm374_vm9, %v2545_v34  ;;  %2265 = vmatprep.subr.mxu0 %v2679_v21 }
 0x135   : > { %2300 = vmatprep.subr.msk.mxu1 %vm374_vm9, %v2545_v34  ;;  %2266 = vmatpush3.msra.mxu0 %v2679_v21 }
 0x136   : > { %2301 = vmatpush3.msk.msra.mxu1 %vm374_vm9, %v2545_v34  ;;  %2267 = vmatprep.subr.mxu0 %v2679_v21 }
 0x137   : > { %2302 = vmatprep.subr.msk.mxu1 %vm374_vm9, %v2545_v34  ;;  %2268 = vmatpush3.msra.mxu0 %v2679_v21 }
 0x138   : > { %2303 = vmatpush3.msk.msra.mxu1 %vm374_vm9, %v2545_v34  ;;  %2269 = vmatprep.subr.mxu0 %v2696_v27 }
 0x139   : > { %2304 = vmatprep.subr.msk.mxu1 %vm370_vm10, %v2545_v34  ;;  %2270 = vmatpush3.msra.mxu0 %v2696_v27 }
 0x13a   : > { %2305 = vmatpush3.msk.msra.mxu1 %vm370_vm10, %v2545_v34  ;;  %2271 = vmatprep.subr.mxu0 %v2696_v27 }
 0x13b   : > { %2306 = vmatprep.subr.msk.mxu1 %vm370_vm10, %v2545_v34  ;;  %2272 = vmatpush3.msra.mxu0 %v2696_v27 }
 0x13c   : > { %2307 = vmatpush3.msk.msra.mxu1 %vm370_vm10, %v2545_v34  ;;  %2273 = vmatprep.subr.mxu0 %v2696_v27 }
 0x13d   : > { %2308 = vmatprep.subr.msk.mxu1 %vm370_vm10, %v2545_v34  ;;  %2274 = vmatpush3.msra.mxu0 %v2696_v27 }
 0x13e   : > { %2309 = vmatpush3.msk.msra.mxu1 %vm370_vm10, %v2545_v34  ;;  %2275 = vmatprep.subr.mxu0 %v2696_v27 }
 0x13f   : > { %2310 = vmatprep.subr.msk.mxu1 %vm370_vm10, %v2545_v34  ;;  %2276 = vmatpush3.msra.mxu0 %v2696_v27 }
 0x140   : > { %2311 = vmatpush3.msk.msra.mxu1 %vm370_vm10, %v2545_v34  ;;  %2277 = vmatprep.subr.mxu0 %v2725_v35 }
 0x141   : > { %2313 = vmatmul.mubr.f32.vlgmr.msra.gmra.mxu1 %v1067_v31  ;;  %2342 = vmatprep.subr.msk.mxu1 %vm378_vm8, %v2545_v34 }
 0x142   : > { %2278 = vmatpush3.msra.mxu0 %v2725_v35  ;;  %2343 = vmatpush3.msk.msra.mxu1 %vm378_vm8, %v2545_v34 }
 0x143   : > { %2366 = vmatprep.mubr.f32.mxu1 %v3036_v23  ;;  %2279 = vmatprep.subr.mxu0 %v2725_v35 }
 0x144   : > { %2344 = vmatprep.subr.msk.mxu1 %vm378_vm8, %v2545_v34  ;;  %2280 = vmatpush3.msra.mxu0 %v2725_v35 }
 0x145   : > { %2345 = vmatpush3.msk.msra.mxu1 %vm378_vm8, %v2545_v34  ;;  %2281 = vmatprep.subr.mxu0 %v2725_v35 }
 0x146   : > { %2346 = vmatprep.subr.msk.mxu1 %vm378_vm8, %v2545_v34  ;;  %2282 = vmatpush3.msra.mxu0 %v2725_v35 }
 0x147   : > { %2347 = vmatpush3.msk.msra.mxu1 %vm378_vm8, %v2545_v34  ;;  %2283 = vmatprep.subr.mxu0 %v2725_v35 }
 0x148   : > { %2348 = vmatprep.subr.msk.mxu1 %vm378_vm8, %v2545_v34  ;;  %2284 = vmatpush3.msra.mxu0 %v2725_v35 }
 0x149   : > { %2349 = vmatpush3.msk.msra.mxu1 %vm378_vm8, %v2545_v34  ;;  %2286 = vmatmul.mubr.f32.vlgmr.msra.gmra.mxu0 %v3150_v40 }
 0x14a   : > { %2315 = vmatprep.subr.mxu0 %v2682_v22  ;;  %2350 = vmatprep.subr.msk.mxu1 %vm374_vm9, %v2545_v34 }
 0x14b   : > { %2316 = vmatpush3.msra.mxu0 %v2682_v22  ;;  %2339 = vmatprep.mubr.f32.mxu0 %v3036_v23 }
 0x14c   : > { %2351 = vmatpush3.msk.msra.mxu1 %vm374_vm9, %v2545_v34  ;;  %2317 = vmatprep.subr.mxu0 %v2682_v22 }
 0x14d   : > { %2352 = vmatprep.subr.msk.mxu1 %vm374_vm9, %v2545_v34  ;;  %2318 = vmatpush3.msra.mxu0 %v2682_v22 }
 0x14e   : > { %2353 = vmatpush3.msk.msra.mxu1 %vm374_vm9, %v2545_v34  ;;  %2319 = vmatprep.subr.mxu0 %v2682_v22 }
 0x14f   : > { %2354 = vmatprep.subr.msk.mxu1 %vm374_vm9, %v2545_v34  ;;  %2320 = vmatpush3.msra.mxu0 %v2682_v22 }
 0x150   : > { %2355 = vmatpush3.msk.msra.mxu1 %vm374_vm9, %v2545_v34  ;;  %2321 = vmatprep.subr.mxu0 %v2682_v22 }
 0x151   : > { %2356 = vmatprep.subr.msk.mxu1 %vm374_vm9, %v2545_v34  ;;  %2322 = vmatpush3.msra.mxu0 %v2682_v22 }
 0x152   : > { %2357 = vmatpush3.msk.msra.mxu1 %vm374_vm9, %v2545_v34  ;;  %2323 = vmatprep.subr.mxu0 %v2701_v29 }
 0x153   : > { %2358 = vmatprep.subr.msk.mxu1 %vm370_vm10, %v2545_v34  ;;  %2324 = vmatpush3.msra.mxu0 %v2701_v29 }
 0x154   : > { %2359 = vmatpush3.msk.msra.mxu1 %vm370_vm10, %v2545_v34  ;;  %2325 = vmatprep.subr.mxu0 %v2701_v29 }
 0x155   : > { %2360 = vmatprep.subr.msk.mxu1 %vm370_vm10, %v2545_v34  ;;  %2326 = vmatpush3.msra.mxu0 %v2701_v29 }
 0x156   : > { %2361 = vmatpush3.msk.msra.mxu1 %vm370_vm10, %v2545_v34  ;;  %2327 = vmatprep.subr.mxu0 %v2701_v29 }
 0x157   : > { %2362 = vmatprep.subr.msk.mxu1 %vm370_vm10, %v2545_v34  ;;  %2328 = vmatpush3.msra.mxu0 %v2701_v29 }
 0x158   : > { %2363 = vmatpush3.msk.msra.mxu1 %vm370_vm10, %v2545_v34  ;;  %2329 = vmatprep.subr.mxu0 %v2701_v29 }
 0x159   : > { %2364 = vmatprep.subr.msk.mxu1 %vm370_vm10, %v2545_v34  ;;  %2330 = vmatpush3.msra.mxu0 %v2701_v29 }
 0x15a   : > { %2365 = vmatpush3.msk.msra.mxu1 %vm370_vm10, %v2545_v34  ;;  %2331 = vmatprep.subr.mxu0 %v2736_v36 }
 0x15b   : > { %2367 = vmatmul.mubr.f32.vlgmr.msra.gmra.mxu1 %v3131_v5  ;;  %2332 = vmatpush3.msra.mxu0 %v2736_v36 }
 0x15c   : > { %2333 = vmatprep.subr.mxu0 %v2736_v36 }
 0x15d   : > { %2334 = vmatpush3.msra.mxu0 %v2736_v36 }
 0x15e   : > { %2335 = vmatprep.subr.mxu0 %v2736_v36 }
 0x15f   : > { %2336 = vmatpush3.msra.mxu0 %v2736_v36 }
 0x160   : > { %2337 = vmatprep.subr.mxu0 %v2736_v36 }
 0x161   : > { %2338 = vmatpush3.msra.mxu0 %v2736_v36 }
 0x162   : > { %2340 = vmatmul.mubr.f32.vlgmr.msra.gmra.mxu0 %v3131_v5 }
 0x19a   : > { %v2098_v3 = vpop.f32.mrf.mxu1 }
 0x19c   : > { %v624_v22 = vpop.f32.mrf.mxu1 }
 0x1a2   : > { %v2071_v21 = vpop.f32.mrf.mxu0 }
 0x1a3   : > { %v631_v54 = vadd.f32 %v2098_v3, %v2071_v21 }
 0x1a4   : > { %v495_v27 = vpop.f32.mrf.mxu0 }
 0x1a5   : > { %v625_v29 = vadd.f32 %v624_v22, %v495_v27 }
 0x1b3   : > { %v2152_v34 = vpop.f32.mrf.mxu1 }
 0x1b5   : > { %v794_v48 = vpop.f32.mrf.mxu1 }
 0x1bb   : > { %v2125_v35 = vpop.f32.mrf.mxu0 }
 0x1bc   : > { %v722_v55 = vadd.f32 %v2125_v35, %v631_v54 }
 0x1bd   : > { %v714_v42 = vpop.f32.mrf.mxu0 }
 0x1be   : > { %v715_v47 = vadd.f32 %v714_v42, %v625_v29  ;;  %v803_v56 = vadd.f32 %v2152_v34, %v722_v55 }
 0x1c0   : > { %v795_v53 = vadd.f32 %v794_v48, %v715_v47 }
 0x1cd   : > { %v2206_v59 = vpop.f32.mrf.mxu1 }
 0x1cf   : > { %v974_v1 = vpop.f32.mrf.mxu1 }
 0x1d5   : > { %v2179_v57 = vpop.f32.mrf.mxu0 }
 0x1d6   : > { %v904_v58 = vadd.f32 %v2179_v57, %v803_v56 }
 0x1d7   : > { %v897_v62 = vpop.f32.mrf.mxu0 }
 0x1d8   : > { %v981_v36 = vadd.f32 %v2206_v59, %v904_v58  ;;  %v898_v9 = vadd.f32 %v897_v62, %v795_v53 }
 0x1da   : > { %2454 = vlog2.f32 %v981_v36  ;;  %v975_v14 = vadd.f32 %v974_v1, %v898_v9  ;;  %v2458_v1 = vld [vmem:[%s3462_s1] sm:$0xff] }
 0x1db   : > { %vm213_vm4 = vcmp.gt.s32.totalorder %v2458_v1, 0 }
 0x1dc   : > { %2456 = vlog2.f32 %v975_v14 }
 0x1e7   : > { %v2455_v60 = vpop.eup %2454  ;;  %v2260_v4 = vpop.f32.mrf.mxu1 }
 0x1e8   : > { %v3400_v61 = vmul.f32 0.6931472, %v2455_v60 }
 0x1e9   : > { %v1190_v10 = vpop.f32.mrf.mxu1  ;;  %v2457_v5 = vpop.eup %2456 }
 0x1ea   : > { %1558 = vrot.lane.b32.xlu0 %v3400_v61, %s2547_s25  ;;  %v1551_v31 = vmul.f32 0.6931472, %v2457_v5 }
 0x1ee   : > { %1566 = vrot.lane.b32.xlu0 %v3400_v61, %s2548_s26 }
 0x1ef   : > { %v2233_v63 = vpop.f32.mrf.mxu0 }
 0x1f0   : > { %v1197_v11 = vadd.f32 %v2260_v4, %v2233_v63 }
 0x1f1   : > { %v1061_v7 = vpop.f32.mrf.mxu0 }
 0x1f2   : > { %v1191_v15 = vadd.f32 %v1190_v10, %v1061_v7 }
 0x201   : > { %v2314_v12 = vpop.f32.mrf.mxu1 }
 0x203   : > { %v1360_v18 = vpop.f32.mrf.mxu1 }
 0x209   : > { %v2287_v8 = vpop.f32.mrf.mxu0 }
 0x20a   : > { %v1288_v16 = vadd.f32 %v2287_v8, %v1197_v11 }
 0x20b   : > { %v1280_v13 = vpop.f32.mrf.mxu0 }
 0x20c   : > { %v1281_v17 = vadd.f32 %v1280_v13, %v1191_v15  ;;  %v1369_v20 = vadd.f32 %v2314_v12, %v1288_v16 }
 0x20e   : > { %v1361_v26 = vadd.f32 %v1360_v18, %v1281_v17 }
 0x21b   : > { %v2368_v6 = vpop.f32.mrf.mxu1 }
 0x21d   : > { %v1540_v37 = vpop.f32.mrf.mxu1 }
 0x222   : > { %v2341_v23 = vpop.f32.mrf.mxu0 }
 0x223   : > { %v1470_v25 = vadd.f32 %v2341_v23, %v1369_v20 }
 0x224   : > { %v1463_v28 = vpop.f32.mrf.mxu0 }
 0x225   : > { %v1547_v30 = vadd.f32 %v2368_v6, %v1470_v25  ;;  %v1464_v32 = vadd.f32 %v1463_v28, %v1361_v26 }
 0x227   : > { %v1541_v38 = vadd.f32 %v1540_v37, %v1464_v32  ;;  %1580 = vrot.lane.b32.xlu0 %v1547_v30, %s2547_s25  ;;  %vm1601_vm6 = vcmp.ge.f32.partialorder %v1547_v30, %v2839_v49  ;;  %vm1599_vm10 = vcmp.ge.f32.partialorder %v1547_v30, %v2831_v45  ;;  %v1572_v45 = vmul.f32 3.0, %v2847_v52 }
 0x228   : > { %v1603_v40 = vsel %vm1601_vm6, 1, %v2543_v2  ;;  %vm1597_vm0 = vcmp.ge.f32.partialorder %v1547_v30, %v2827_v43 }
 0x229   : > { %vm1600_vm3 = vcmp.ge.f32.partialorder %v1541_v38, %v2841_v50  ;;  %vm1598_vm7 = vcmp.ge.f32.partialorder %v1541_v38, %v2833_v46  ;;  %vm1596_vm13 = vcmp.ge.f32.partialorder %v1541_v38, %v2829_v44  ;;  %v1573_v44 = vmul.f32 3.0, %v2844_v51 }
 0x22a   : > { %v1602_v24 = vsel %vm1600_vm3, 1, %v2543_v2  ;;  %vm214_vm3 = vcmp.gt.s32.totalorder %v2719_v33, 0 }
 0x22b   : > { %1604 = vrot.lane.b32.xlu1 %v1602_v24, %s2547_s25 }
 0x22f   : > { %1606 = vrot.lane.b32.xlu1 %v1603_v40, %s2547_s25 }
 0x233   : > { %1556 = vrot.lane.b32.xlu1 %v1551_v31, %s2547_s25 }
 0x237   : > { %1564 = vrot.lane.b32.xlu1 %v1551_v31, %s2548_s26 }
 0x23b   : > { %1578 = vrot.lane.b32.xlu1 %v1541_v38, %s2547_s25 }
 0x25c   : > { %v1559_v3 = vpop.permute.xlu0 %1558 }
 0x25d   : > { %v1563_v47 = vadd.f32 %v1559_v3, %v3400_v61 }
 0x260   : > { %v1567_v22 = vpop.permute.xlu0 %1566 }
 0x261   : > { %v1571_v56 = vadd.f32 %v1567_v22, %v1563_v47 }
 0x263   : > { %v1575_v61 = vadd.f32 %v1573_v44, %v1571_v56 }
 0x299   : > { %v1581_v34 = vpop.permute.xlu0 %1580 }
 0x29a   : > { %v1585_v59 = vadd.f32 %v1581_v34, %v1547_v30 }
 0x29d   : > { %v1605_v39 = vpop.permute.xlu1 %1604 }
 0x29e   : > { %vm1608_vm8 = vcmp.ne.s32.totalorder %v1605_v39, 0 }
 0x29f   : > { %vm1610_vm9 = vmand %vm1598_vm7, %vm1608_vm8 }
 0x2a0   : > { %v1612_v50 = vsel %vm1610_vm9, 1, %v2543_v2  ;;  %vm1650_vm9 = vcmask 7168  }
 0x2a1   : > { %v1607_v49 = vpop.permute.xlu1 %1606  ;;  %1614 = vrot.lane.b32.xlu1 %v1612_v50, %s2547_s25 }
 0x2a2   : > { %vm1609_vm11 = vcmp.ne.s32.totalorder %v1607_v49, 0  ;;  %v298_v49 = vshrl.u32 %v215_v0, 7 }
 0x2a3   : > { %vm1611_vm12 = vmand %vm1599_vm10, %vm1609_vm11 }
 0x2a4   : > { %v1613_v41 = vsel %vm1611_vm12, 1, %v2543_v2  ;;  %vm1685_vm10 = vcmp.eq.s32.totalorder %v298_v49, 0 }
 0x2a5   : > { %1616 = vrot.lane.b32.xlu0 %v1613_v41, %s2547_s25  ;;  %1586 = vrot.lane.b32.xlu1 %v1541_v38, %s2548_s26  ;;  %v1557_v46 = vpop.permute.xlu1 %1556 }
 0x2a6   : > { %v1562_v29 = vadd.f32 %v1557_v46, %v1551_v31 }
 0x2a9   : > { %1588 = vrot.lane.b32.xlu0 %v1547_v30, %s2548_s26  ;;  %v1565_v21 = vpop.permute.xlu1 %1564 }
 0x2aa   : > { %v1570_v42 = vadd.f32 %v1565_v21, %v1562_v29 }
 0x2ac   : > { %v1574_v57 = vadd.f32 %v1572_v45, %v1570_v42 }
 0x2ad   : > { %v1579_v27 = vpop.permute.xlu1 %1578 }
 0x2ae   : > { %v1584_v48 = vadd.f32 %v1579_v27, %v1541_v38 }
 0x313   : > { %v1615_v35 = vpop.permute.xlu1 %1614 }
 0x314   : > { %vm1618_vm14 = vcmp.ne.s32.totalorder %v1615_v35, 0 }
 0x315   : > { %vm1620_vm15 = vmand %vm1596_vm13, %vm1618_vm14 }
 0x316   : > { %v1622_v53 = vsel %vm1620_vm15, 1, %v2543_v2 }
 0x317   : > { %v1587_v54 = vpop.permute.xlu1 %1586  ;;  %1624 = vrot.lane.b32.xlu1 %v1622_v53, %s2549_s27  ;;  %v1617_v55 = vpop.permute.xlu0 %1616 }
 0x318   : > { %v1592_v58 = vadd.f32 %v1587_v54, %v1584_v48  ;;  %vm1619_vm1 = vcmp.ne.s32.totalorder %v1617_v55, 0 }
 0x319   : > { %vm1621_vm2 = vmand %vm1597_vm0, %vm1619_vm1 }
 0x31a   : > { %v1594_v52 = vsub.f32 %v1574_v57, %v1592_v58  ;;  %v1623_v36 = vsel %vm1621_vm2, 1, %v2543_v2 }
 0x31b   : > { %1626 = vrot.lane.b32.xlu0 %v1623_v36, %s2549_s27  ;;  %v1589_v60 = vpop.permute.xlu0 %1588 }
 0x31c   : > { %v1593_v62 = vadd.f32 %v1589_v60, %v1585_v59  ;;  %1634 = vrot.lane.b32.xlu1 %v1594_v52, %s2549_s27 }
 0x31e   : > { %v1595_v63 = vsub.f32 %v1575_v61, %v1593_v62 }
 0x320   : > { %1636 = vrot.lane.b32.xlu0 %v1595_v63, %s2549_s27 }
 0x389   : > { %v1625_v43 = vpop.permute.xlu1 %1624 }
 0x38a   : > { %vm1628_vm5 = vcmp.ne.s32.totalorder %v1625_v43, 0 }
 0x38b   : > { %vm1630_vm6 = vmand %vm213_vm4, %vm1628_vm5 }
 0x38c   : > { %v1663_v7 = vsel %vm1630_vm6, 1.0, %v2544_v19 }
 0x38d   : > { %v1627_v51 = vpop.permute.xlu0 %1626 }
 0x38e   : > { %vm1629_vm7 = vcmp.ne.s32.totalorder %v1627_v51, 0  ;;  %v1635_v2 = vpop.permute.xlu1 %1634 }
 0x38f   : > { %vm1631_vm8 = vmand %vm214_vm3, %vm1629_vm7  ;;  %v1640_v4 = vsel %vm213_vm4, %v1635_v2, 0.0 }
 0x390   : > { %v1664_v8 = vsel %vm1631_vm8, 1.0, %v2544_v19  ;;  %1644 = vrot.lane.b32.xlu1 %v1640_v4, %s2550_s30 }
 0x391   : > { %v2444_v9 = vpack.i.bf16 %v1664_v8, %v1663_v7 }
 0x392   : > { %v1637_v10 = vpop.permute.xlu0 %1636 }
 0x393   : > { %v1641_v11 = vsel %vm214_vm3, %v1637_v10, 0.0 }
 0x394   : > { %2445 = vrot.lane.b32.xlu1 %v2444_v9, %s2550_s30  ;;  %1646 = vrot.lane.b32.xlu0 %v1641_v11, %s2550_s30 }
 0x402   : > { %v1645_v12 = vpop.permute.xlu1 %1644 }
 0x403   : > { %v1651_v14 = vsel %vm1650_vm9, %v1645_v12, 0.0 }
 0x406   : > { %v2446_v33 = vpop.permute.xlu1 %2445  ;;  %v1647_v13 = vpop.permute.xlu0 %1646 }
 0x407   : > { %v2448_v15 = vunpack.i.h.bf16 %v2446_v33  ;;  %v2447_v16 = vunpack.i.l.bf16 %v2446_v33  ;;  %v1652_v17 = vsel %vm1650_vm9, %v1647_v13, 0.0 }
 0x408   : > { %v1653_v18 = vadd.f32 %v1652_v17, %v1651_v14 }
 0x409   : > { %v1673_v20 = vsel %vm1650_vm9, %v2447_v16, 0.0  ;;  %v1674_v6 = vsel %vm1650_vm9, %v2448_v15, 0.0 }
 0x40a   : > { %1654 = vadd.xlane.f32.xlu0 %v1653_v18  ;;  %v1675_v19 = vadd.f32 %v1674_v6, %v1673_v20 }
 0x40c   : > { %1676 = vadd.xlane.f32.xlu1 %v1675_v19 }
 0x493   : > { %v1655_v23 = vpop.xlane.xlu0 %1654 }
 0x494   : > { %v1656_v25 = vrot.slane %v1655_v23, 4 }
 0x495   : > { %v1677_v26 = vpop.xlane.xlu1 %1676 }
 0x496   : > { %v1657_v28 = vadd.f32 %v1656_v25, %v1655_v23  ;;  %v1678_v30 = vrot.slane %v1677_v26, 4 }
 0x498   : > { %v1658_v32 = vrot.slane %v1657_v28, 2  ;;  %v1679_v37 = vadd.f32 %v1678_v30, %v1677_v26 }
 0x49a   : > { %v1680_v38 = vrot.slane %v1679_v37, 2  ;;  %v1659_v24 = vadd.f32 %v1658_v32, %v1657_v28 }
 0x49c   : > { %v1681_v5 = vadd.f32 %v1680_v38, %v1679_v37  ;;  %v1660_v40 = vrot.slane %v1659_v24, 1 }
 0x49e   : > { %v1661_v31 = vadd.f32 %v1660_v40, %v1659_v24  ;;  %v1682_v39 = vrot.slane %v1681_v5, 1 }
 0x4a0   : > { %2369 = vpush %v1661_v31  ;;  %v1683_v50 = vadd.f32 %v1682_v39, %v1681_v5 }
 0x4a2   : > { %2371 = vpush %v1683_v50 }
 0x4d1   : > { %s2370_s4 = spop %2369 }
 0x4d2   : > { %v1686_v41 = vstv %s2370_s4 }
 0x4d3   : > { %s2372_s8 = spop %2371 }
 0x4d4   : > { %v1687_v46 = vstv %s2372_s8 }
 0x4d5   : > { %v1688_v3 = vsel %vm1685_vm10, %v1686_v41, %v1687_v46 }
 0x4d6   : > { %1689 = vst [vmem:[%s208_s7] sm:$0x3] %v1688_v3 }
 0x4d7 PF: > { %s15_s14 = sadd.s32 1, %s2537_s14   ;;  %s3471_s9 = smov %s2521_s10 }
 0x4d8   : > { %p12_p8 = scmp.ge.s32.totalorder %s15_s14, 4   ;;  %s3472_s10 = smov %s2525_s11 }
 0x4d9   : > { %s3473_s11 = smov %s2615_s21  ;;  %s3474_s12 = smov %s2533_s13 }
 0x4da   : > { %s3475_s13 = smov %s3477_s16  ;;  %14 = sbr.rel (!%p12_p8) target bundleno = 4 (0x4), region = 71 }
 0x4df   :  { %1715 = vsyncpa [#allocation3], 1 }
 0x4e0   :  { %1717 = vsyncpa [#allocation3 + $0x1], 1 }

</bundles_post_ra>
